<compile_context>
chip_gen: v7x
topology: tpu7x:2x2x1
jax: 0.10.0
libtpu: 0.0.40
codegen_flags: <defaults>
</compile_context>

<pallas_src>
import functools

import jax
import jax.numpy as jnp
import numpy as np
from jax.experimental import pallas as pl
from jax.experimental.pallas import tpu as pltpu


def _deconv_phase_relu_kernel(x_ref, w_ref, b_ref, o_ref, *, tap_plan, Cin, Lp):
    # x_ref: (1, Cin, Lp)           padded (NOT dilated) input, spatial on lanes
    # w_ref: (Cout, K*K*Cin)        dense flipped weights, tap-major columns
    # b_ref: (Cout, 1)
    # o_ref: (1, n_phases, Cout, Lp)  per-phase wide, lane-dense output blocks
    # tap_plan[pi] = ((tap_index, flat_lane_shift), ...)   -- all static
    xin = x_ref[0]                    # (Cin, Lp): one load, reused by every tap
    wv = w_ref[...]                   # (Cout, K*K*Cin)
    bv = b_ref[...]                   # (Cout, 1)
    Cout = o_ref.shape[2]

    # Trace-time dedup of lane shifts shared across phases.  Each shift is a
    # pure XLU lane rotation feeding the MXU (different VLIW slots).
    shifted = {0: xin}

    def tap_input(off):
        if off not in shifted:
            # want result[l] == xin[l + off]  (== jnp.roll(xin, -off)); use the
            # equivalent positive shift.  Wrap-around never lands in a
            # meaningful lane (wrapper asserts Hpad*Wpad <= Lp).
            shifted[off] = pltpu.roll(xin, shift=Lp - off, axis=1)
        return shifted[off]

    for pi, taps in enumerate(tap_plan):           # static unroll: s*s phases
        acc = jnp.zeros((Cout, Lp), jnp.float32)   # few vregs, no spills
        for t, off in taps:                        # static unroll: taps of phase
            w_t = wv[:, t * Cin:(t + 1) * Cin]     # (Cout, Cin) static slice
            acc = acc + jnp.dot(w_t, tap_input(off),
                                preferred_element_type=jnp.float32)
        # bias + ReLU, lane-dense (Lp % 128 == 0) store.
        o_ref[0, pi] = jnp.maximum(acc + bv, 0.0).astype(o_ref.dtype)


def conv_transpose_block(x_nchw, weight, bias, *, kernel_size, stride,
                         padding, output_padding):
    """ConvTranspose2d(x, weight, bias) followed by ReLU.
    x is NCHW, weight has PyTorch layout (Cin, Cout, K, K), bias (Cout,)."""
    N, Cin, H, W = x_nchw.shape
    K, s, p, op = kernel_size, stride, padding, output_padding
    Cout = weight.shape[1]
    Hout = (H - 1) * s - 2 * p + K + op
    Wout = (W - 1) * s - 2 * p + K + op
    assert Hout > 0 and Wout > 0, "degenerate output size"

    # ---- phase (sub-pixel) decomposition geometry (all static Python) ------
    lo = K - 1 - p
    ph_of = [(lo - k) % s for k in range(K)]              # phase owning tap k
    dh_of = [(ph_of[k] + k - lo) // s for k in range(K)]  # un-dilated input delta
    dmin, dmax = min(dh_of), max(dh_of)
    d_adj = [d - dmin for d in dh_of]                     # >= 0 after edge pad

    Hph = -(-Hout // s)            # uniform per-phase output rows (ceil)
    Wph = -(-Wout // s)
    Hpad = Hph + (dmax - dmin)     # padded (un-dilated) input extent actually read
    Wpad = Wph + (dmax - dmin)

    # ---- input prep: ONE fused pad/crop, no zero-dilation ------------------
    pad_top, pad_left = -dmin, -dmin                 # may be negative when p > K-1
    pad_bot, pad_right = Hpad - H - pad_top, Wpad - W - pad_left
    zero = jnp.array(0, dtype=x_nchw.dtype)
    x_pad = jax.lax.pad(x_nchw, zero,
                        ((0, 0, 0), (0, 0, 0),
                         (pad_top, pad_bot, 0), (pad_left, pad_right, 0)))

    # Flatten spatial onto the lane axis; round up to a multiple of 128 so the
    # tap rolls and the output stores are whole-vreg / unmasked.
    Lp = ((Hpad * Wpad + 127) // 128) * 128
    x_flat = jnp.pad(x_pad.reshape(N, Cin, Hpad * Wpad),
                     ((0, 0), (0, 0), (0, Lp - Hpad * Wpad)))

    # Roll wrap-around safety (review correctness concern): the largest lane
    # any meaningful output position reads is Hpad*Wpad - 1 < Lp.
    assert (Hph - 1) * Wpad + (Wph - 1) + max(d_adj) * Wpad + max(d_adj) < Lp

    # ---- weights: (Cin,Cout,K,K) --flip spatial--> dense (Cout, K*K*Cin) ---
    wf = jnp.flip(weight, axis=(2, 3))
    w2 = jnp.transpose(wf, (1, 2, 3, 0)).reshape(Cout, K * K * Cin).astype(jnp.float32)
    b2 = bias.reshape(Cout, 1).astype(jnp.float32)

    # ---- static per-phase tap plan: (weight tap index, flat lane shift) ----
    tap_plan = []
    for ph in range(s):
        for pw in range(s):
            taps = []
            for kh in range(K):
                if ph_of[kh] != ph:
                    continue
                for kw in range(K):
                    if ph_of[kw] != pw:
                        continue
                    taps.append((kh * K + kw, d_adj[kh] * Wpad + d_adj[kw]))
            tap_plan.append(tuple(taps))
    tap_plan = tuple(tap_plan)
    n_ph = s * s

    kern = functools.partial(_deconv_phase_relu_kernel,
                             tap_plan=tap_plan, Cin=Cin, Lp=Lp)

    out_wide = pl.pallas_call(
        kern,
        out_shape=jax.ShapeDtypeStruct((N, n_ph, Cout, Lp), x_nchw.dtype),
        grid_spec=pltpu.PrefetchScalarGridSpec(
            num_scalar_prefetch=0,
            grid=(N,),
            in_specs=[
                pl.BlockSpec((1, Cin, Lp), lambda n: (n, 0, 0)),
                pl.BlockSpec((Cout, K * K * Cin), lambda n: (0, 0)),
                pl.BlockSpec((Cout, 1), lambda n: (0, 0)),
            ],
            out_specs=pl.BlockSpec((1, n_ph, Cout, Lp), lambda n: (n, 0, 0, 0)),
        ),
        compiler_params=pltpu.CompilerParams(
            dimension_semantics=("parallel",),
            vmem_limit_bytes=32 * 1024 * 1024,
        ),
    )(x_flat, w2, b2)

    # ---- interleave the s*s phases back into NCHW (wrapper-side) -----------
    o = out_wide[:, :, :, :Hph * Wpad].reshape(N, s, s, Cout, Hph, Wpad)
    o = o[..., :Wph]                                 # drop flat-row overhang cols
    o = jnp.transpose(o, (0, 3, 4, 1, 5, 2))         # (N, Cout, Hph, s, Wph, s)
    out = o.reshape(N, Cout, Hph * s, Wph * s)[:, :, :Hout, :Wout]
    return out


def _reference(x_nchw, weight, bias, K, s, p, op):
    """Independent scatter-style ConvTranspose2d + ReLU reference (numpy)."""
    x = np.asarray(x_nchw, np.float32)
    Wt = np.asarray(weight, np.float32)
    b = np.asarray(bias, np.float32)
    N, Cin, H, Wi = x.shape
    Cout = Wt.shape[1]
    Hout = (H - 1) * s - 2 * p + K + op
    Wout = (Wi - 1) * s - 2 * p + K + op
    out = np.zeros((N, Cout, Hout, Wout), np.float32)
    for kh in range(K):
        for kw in range(K):
            contrib = np.einsum('nchw,co->nohw', x, Wt[:, :, kh, kw])
            for h in range(H):
                ho = h * s - p + kh
                if not (0 <= ho < Hout):
                    continue
                for w in range(Wi):
                    wo = w * s - p + kw
                    if not (0 <= wo < Wout):
                        continue
                    out[:, :, ho, wo] += contrib[:, :, h, w]
    out += b[None, :, None, None]
    return np.maximum(out, 0.0)


def _run_case(N, Cin, H, W, Cout, K, S, P, OP, key):
    kx, kw, kb = jax.random.split(key, 3)
    x = jax.random.normal(kx, (N, Cin, H, W), jnp.float32)
    # PyTorch ConvTranspose2d weight layout: (Cin, Cout, K, K); bias: (Cout,)
    weight = jax.random.normal(kw, (Cin, Cout, K, K), jnp.float32) * 0.1
    bias = jax.random.normal(kb, (Cout,), jnp.float32) * 0.1

    y = conv_transpose_block(x, weight, bias, kernel_size=K, stride=S,
                             padding=P, output_padding=OP)
    y = jax.block_until_ready(y)

    y_ref = _reference(x, weight, bias, K, S, P, OP)
    assert y.shape == y_ref.shape == (N, Cout,
                                      (H - 1) * S - 2 * P + K + OP,
                                      (W - 1) * S - 2 * P + K + OP)
    np.testing.assert_allclose(np.asarray(y), y_ref, rtol=1e-4, atol=1e-4)


if __name__ == "__main__":
    key = jax.random.PRNGKey(0)
    k1, k2, k3 = jax.random.split(key, 3)

    # ConvTransposeBlock(4, 8, config=(kernel=4, stride=2, padding=1),
    #                    out_pad=0, batch_norm=False, activation='relu')
    _run_case(N=2, Cin=4, H=16, W=16, Cout=8, K=4, S=2, P=1, OP=0, key=k1)

    # Same block with config=(3, 2, 1), out_pad=1 (exercises output_padding).
    _run_case(N=2, Cin=4, H=8, W=8, Cout=8, K=3, S=2, P=1, OP=1, key=k2)

    # Odd output size (Hout % stride != 0) + no padding: exercises the uniform
    # per-phase rounding / crop path of the phase decomposition.
    _run_case(N=1, Cin=4, H=5, W=5, Cout=8, K=3, S=2, P=0, OP=0, key=k3)

    print("KERNEL_OK")
</pallas_src>

<mosaic_0001>
module attributes {stable_mosaic.version = 11 : i64} {
  func.func @_deconv_phase_relu_kernel(%arg0: i32, %arg1: memref<1x4x384xf32, #tpu.memory_space<vmem>>, %arg2: memref<8x64xf32, #tpu.memory_space<vmem>>, %arg3: memref<8x1xf32, #tpu.memory_space<vmem>>, %arg4: memref<1x4x8x384xf32, #tpu.memory_space<vmem>>) attributes {dimension_semantics = [#tpu.dimension_semantics<parallel>], iteration_bounds = array<i64: 2>, scalar_prefetch = 0 : i64, scratch_operands = 0 : i64, tpu.core_type = #tpu.core_type<tc>, window_params = [{transform_indices = @transform_0, window_bounds = array<i64: 1, 4, 384>}, {pipeline_mode = #tpu.pipeline_mode<synchronous>, transform_indices = @transform_1, window_bounds = array<i64: 8, 64>}, {pipeline_mode = #tpu.pipeline_mode<synchronous>, transform_indices = @transform_2, window_bounds = array<i64: 8, 1>}, {transform_indices = @transform_3, window_bounds = array<i64: 1, 4, 8, 384>}]} {
    %c0 = arith.constant 0 : index
    %c0_0 = arith.constant 0 : index
    %c0_1 = arith.constant 0 : index
    %0 = vector.load %arg1[%c0, %c0_0, %c0_1] : memref<1x4x384xf32, #tpu.memory_space<vmem>>, vector<1x4x384xf32>
    %1 = vector.shape_cast %0 : vector<1x4x384xf32> to vector<4x384xf32>
    %c0_2 = arith.constant 0 : index
    %c0_3 = arith.constant 0 : index
    %2 = vector.load %arg2[%c0_2, %c0_3] : memref<8x64xf32, #tpu.memory_space<vmem>>, vector<8x64xf32>
    %c0_4 = arith.constant 0 : index
    %c0_5 = arith.constant 0 : index
    %3 = vector.load %arg3[%c0_4, %c0_5] : memref<8x1xf32, #tpu.memory_space<vmem>>, vector<8x1xf32>
    %cst = arith.constant 0.000000e+00 : f32
    %4 = vector.broadcast %cst : f32 to vector<8x384xf32>
    %5 = vector.extract_strided_slice %2 {offsets = [0, 0], sizes = [8, 4], strides = [1, 1]} : vector<8x64xf32> to vector<8x4xf32>
    %cst_6 = arith.constant dense<0.000000e+00> : vector<8x384xf32>
    %6 = tpu.matmul %5, %1, %cst_6 {dimension_numbers = #tpu.dot_dimension_numbers<[1], [0], [0], [1], [0, 0, 1, 1], [], []>} : vector<8x4xf32>, vector<4x384xf32>, vector<8x384xf32> -> vector<8x384xf32>
    %7 = arith.addf %4, %6 : vector<8x384xf32>
    %8 = vector.extract_strided_slice %2 {offsets = [0, 8], sizes = [8, 4], strides = [1, 1]} : vector<8x64xf32> to vector<8x4xf32>
    %c383_i32 = arith.constant 383 : i32
    %9 = tpu.dynamic_rotate %1 by %c383_i32 dim 1 : vector<4x384xf32>, i32 -> vector<4x384xf32>
    %cst_7 = arith.constant dense<0.000000e+00> : vector<8x384xf32>
    %10 = tpu.matmul %8, %9, %cst_7 {dimension_numbers = #tpu.dot_dimension_numbers<[1], [0], [0], [1], [0, 0, 1, 1], [], []>} : vector<8x4xf32>, vector<4x384xf32>, vector<8x384xf32> -> vector<8x384xf32>
    %11 = arith.addf %7, %10 : vector<8x384xf32>
    %12 = vector.extract_strided_slice %2 {offsets = [0, 32], sizes = [8, 4], strides = [1, 1]} : vector<8x64xf32> to vector<8x4xf32>
    %c366_i32 = arith.constant 366 : i32
    %13 = tpu.dynamic_rotate %1 by %c366_i32 dim 1 : vector<4x384xf32>, i32 -> vector<4x384xf32>
    %cst_8 = arith.constant dense<0.000000e+00> : vector<8x384xf32>
    %14 = tpu.matmul %12, %13, %cst_8 {dimension_numbers = #tpu.dot_dimension_numbers<[1], [0], [0], [1], [0, 0, 1, 1], [], []>} : vector<8x4xf32>, vector<4x384xf32>, vector<8x384xf32> -> vector<8x384xf32>
    %15 = arith.addf %11, %14 : vector<8x384xf32>
    %16 = vector.extract_strided_slice %2 {offsets = [0, 40], sizes = [8, 4], strides = [1, 1]} : vector<8x64xf32> to vector<8x4xf32>
    %c365_i32 = arith.constant 365 : i32
    %17 = tpu.dynamic_rotate %1 by %c365_i32 dim 1 : vector<4x384xf32>, i32 -> vector<4x384xf32>
    %cst_9 = arith.constant dense<0.000000e+00> : vector<8x384xf32>
    %18 = tpu.matmul %16, %17, %cst_9 {dimension_numbers = #tpu.dot_dimension_numbers<[1], [0], [0], [1], [0, 0, 1, 1], [], []>} : vector<8x4xf32>, vector<4x384xf32>, vector<8x384xf32> -> vector<8x384xf32>
    %19 = arith.addf %15, %18 : vector<8x384xf32>
    %20 = vector.broadcast %3 : vector<8x1xf32> to vector<8x384xf32>
    %21 = arith.addf %19, %20 : vector<8x384xf32>
    %cst_10 = arith.constant 0.000000e+00 : f32
    %22 = vector.broadcast %cst_10 : f32 to vector<8x384xf32>
    %23 = arith.maximumf %21, %22 : vector<8x384xf32>
    %c0_11 = arith.constant 0 : index
    %c0_12 = arith.constant 0 : index
    %c0_13 = arith.constant 0 : index
    %c0_14 = arith.constant 0 : index
    %24 = vector.load %arg4[%c0_11, %c0_12, %c0_13, %c0_14] : memref<1x4x8x384xf32, #tpu.memory_space<vmem>>, vector<1x1x8x384xf32>
    %25 = vector.shape_cast %24 : vector<1x1x8x384xf32> to vector<8x384xf32>
    %26 = vector.shape_cast %23 : vector<8x384xf32> to vector<1x1x8x384xf32>
    tpu.vector_store %arg4[%c0_11, %c0_12, %c0_13, %c0_14], %26 {strides = array<i32>} : memref<1x4x8x384xf32, #tpu.memory_space<vmem>>, vector<1x1x8x384xf32>,
    %cst_15 = arith.constant 0.000000e+00 : f32
    %27 = vector.broadcast %cst_15 : f32 to vector<8x384xf32>
    %28 = vector.extract_strided_slice %2 {offsets = [0, 4], sizes = [8, 4], strides = [1, 1]} : vector<8x64xf32> to vector<8x4xf32>
    %cst_16 = arith.constant dense<0.000000e+00> : vector<8x384xf32>
    %29 = tpu.matmul %28, %9, %cst_16 {dimension_numbers = #tpu.dot_dimension_numbers<[1], [0], [0], [1], [0, 0, 1, 1], [], []>} : vector<8x4xf32>, vector<4x384xf32>, vector<8x384xf32> -> vector<8x384xf32>
    %30 = arith.addf %27, %29 : vector<8x384xf32>
    %31 = vector.extract_strided_slice %2 {offsets = [0, 12], sizes = [8, 4], strides = [1, 1]} : vector<8x64xf32> to vector<8x4xf32>
    %c382_i32 = arith.constant 382 : i32
    %32 = tpu.dynamic_rotate %1 by %c382_i32 dim 1 : vector<4x384xf32>, i32 -> vector<4x384xf32>
    %cst_17 = arith.constant dense<0.000000e+00> : vector<8x384xf32>
    %33 = tpu.matmul %31, %32, %cst_17 {dimension_numbers = #tpu.dot_dimension_numbers<[1], [0], [0], [1], [0, 0, 1, 1], [], []>} : vector<8x4xf32>, vector<4x384xf32>, vector<8x384xf32> -> vector<8x384xf32>
    %34 = arith.addf %30, %33 : vector<8x384xf32>
    %35 = vector.extract_strided_slice %2 {offsets = [0, 36], sizes = [8, 4], strides = [1, 1]} : vector<8x64xf32> to vector<8x4xf32>
    %cst_18 = arith.constant dense<0.000000e+00> : vector<8x384xf32>
    %36 = tpu.matmul %35, %17, %cst_18 {dimension_numbers = #tpu.dot_dimension_numbers<[1], [0], [0], [1], [0, 0, 1, 1], [], []>} : vector<8x4xf32>, vector<4x384xf32>, vector<8x384xf32> -> vector<8x384xf32>
    %37 = arith.addf %34, %36 : vector<8x384xf32>
    %38 = vector.extract_strided_slice %2 {offsets = [0, 44], sizes = [8, 4], strides = [1, 1]} : vector<8x64xf32> to vector<8x4xf32>
    %c364_i32 = arith.constant 364 : i32
    %39 = tpu.dynamic_rotate %1 by %c364_i32 dim 1 : vector<4x384xf32>, i32 -> vector<4x384xf32>
    %cst_19 = arith.constant dense<0.000000e+00> : vector<8x384xf32>
    %40 = tpu.matmul %38, %39, %cst_19 {dimension_numbers = #tpu.dot_dimension_numbers<[1], [0], [0], [1], [0, 0, 1, 1], [], []>} : vector<8x4xf32>, vector<4x384xf32>, vector<8x384xf32> -> vector<8x384xf32>
    %41 = arith.addf %37, %40 : vector<8x384xf32>
    %42 = vector.broadcast %3 : vector<8x1xf32> to vector<8x384xf32>
    %43 = arith.addf %41, %42 : vector<8x384xf32>
    %cst_20 = arith.constant 0.000000e+00 : f32
    %44 = vector.broadcast %cst_20 : f32 to vector<8x384xf32>
    %45 = arith.maximumf %43, %44 : vector<8x384xf32>
    %c0_21 = arith.constant 0 : index
    %c1 = arith.constant 1 : index
    %c0_22 = arith.constant 0 : index
    %c0_23 = arith.constant 0 : index
    %46 = vector.load %arg4[%c0_21, %c1, %c0_22, %c0_23] : memref<1x4x8x384xf32, #tpu.memory_space<vmem>>, vector<1x1x8x384xf32>
    %47 = vector.shape_cast %46 : vector<1x1x8x384xf32> to vector<8x384xf32>
    %48 = vector.shape_cast %45 : vector<8x384xf32> to vector<1x1x8x384xf32>
    tpu.vector_store %arg4[%c0_21, %c1, %c0_22, %c0_23], %48 {strides = array<i32>} : memref<1x4x8x384xf32, #tpu.memory_space<vmem>>, vector<1x1x8x384xf32>,
    %cst_24 = arith.constant 0.000000e+00 : f32
    %49 = vector.broadcast %cst_24 : f32 to vector<8x384xf32>
    %50 = vector.extract_strided_slice %2 {offsets = [0, 16], sizes = [8, 4], strides = [1, 1]} : vector<8x64xf32> to vector<8x4xf32>
    %cst_25 = arith.constant dense<0.000000e+00> : vector<8x384xf32>
    %51 = tpu.matmul %50, %13, %cst_25 {dimension_numbers = #tpu.dot_dimension_numbers<[1], [0], [0], [1], [0, 0, 1, 1], [], []>} : vector<8x4xf32>, vector<4x384xf32>, vector<8x384xf32> -> vector<8x384xf32>
    %52 = arith.addf %49, %51 : vector<8x384xf32>
    %53 = vector.extract_strided_slice %2 {offsets = [0, 24], sizes = [8, 4], strides = [1, 1]} : vector<8x64xf32> to vector<8x4xf32>
    %cst_26 = arith.constant dense<0.000000e+00> : vector<8x384xf32>
    %54 = tpu.matmul %53, %17, %cst_26 {dimension_numbers = #tpu.dot_dimension_numbers<[1], [0], [0], [1], [0, 0, 1, 1], [], []>} : vector<8x4xf32>, vector<4x384xf32>, vector<8x384xf32> -> vector<8x384xf32>
    %55 = arith.addf %52, %54 : vector<8x384xf32>
    %56 = vector.extract_strided_slice %2 {offsets = [0, 48], sizes = [8, 4], strides = [1, 1]} : vector<8x64xf32> to vector<8x4xf32>
    %c348_i32 = arith.constant 348 : i32
    %57 = tpu.dynamic_rotate %1 by %c348_i32 dim 1 : vector<4x384xf32>, i32 -> vector<4x384xf32>
    %cst_27 = arith.constant dense<0.000000e+00> : vector<8x384xf32>
    %58 = tpu.matmul %56, %57, %cst_27 {dimension_numbers = #tpu.dot_dimension_numbers<[1], [0], [0], [1], [0, 0, 1, 1], [], []>} : vector<8x4xf32>, vector<4x384xf32>, vector<8x384xf32> -> vector<8x384xf32>
    %59 = arith.addf %55, %58 : vector<8x384xf32>
    %60 = vector.extract_strided_slice %2 {offsets = [0, 56], sizes = [8, 4], strides = [1, 1]} : vector<8x64xf32> to vector<8x4xf32>
    %c347_i32 = arith.constant 347 : i32
    %61 = tpu.dynamic_rotate %1 by %c347_i32 dim 1 : vector<4x384xf32>, i32 -> vector<4x384xf32>
    %cst_28 = arith.constant dense<0.000000e+00> : vector<8x384xf32>
    %62 = tpu.matmul %60, %61, %cst_28 {dimension_numbers = #tpu.dot_dimension_numbers<[1], [0], [0], [1], [0, 0, 1, 1], [], []>} : vector<8x4xf32>, vector<4x384xf32>, vector<8x384xf32> -> vector<8x384xf32>
    %63 = arith.addf %59, %62 : vector<8x384xf32>
    %64 = vector.broadcast %3 : vector<8x1xf32> to vector<8x384xf32>
    %65 = arith.addf %63, %64 : vector<8x384xf32>
    %cst_29 = arith.constant 0.000000e+00 : f32
    %66 = vector.broadcast %cst_29 : f32 to vector<8x384xf32>
    %67 = arith.maximumf %65, %66 : vector<8x384xf32>
    %c0_30 = arith.constant 0 : index
    %c2 = arith.constant 2 : index
    %c0_31 = arith.constant 0 : index
    %c0_32 = arith.constant 0 : index
    %68 = vector.load %arg4[%c0_30, %c2, %c0_31, %c0_32] : memref<1x4x8x384xf32, #tpu.memory_space<vmem>>, vector<1x1x8x384xf32>
    %69 = vector.shape_cast %68 : vector<1x1x8x384xf32> to vector<8x384xf32>
    %70 = vector.shape_cast %67 : vector<8x384xf32> to vector<1x1x8x384xf32>
    tpu.vector_store %arg4[%c0_30, %c2, %c0_31, %c0_32], %70 {strides = array<i32>} : memref<1x4x8x384xf32, #tpu.memory_space<vmem>>, vector<1x1x8x384xf32>,
    %cst_33 = arith.constant 0.000000e+00 : f32
    %71 = vector.broadcast %cst_33 : f32 to vector<8x384xf32>
    %72 = vector.extract_strided_slice %2 {offsets = [0, 20], sizes = [8, 4], strides = [1, 1]} : vector<8x64xf32> to vector<8x4xf32>
    %cst_34 = arith.constant dense<0.000000e+00> : vector<8x384xf32>
    %73 = tpu.matmul %72, %17, %cst_34 {dimension_numbers = #tpu.dot_dimension_numbers<[1], [0], [0], [1], [0, 0, 1, 1], [], []>} : vector<8x4xf32>, vector<4x384xf32>, vector<8x384xf32> -> vector<8x384xf32>
    %74 = arith.addf %71, %73 : vector<8x384xf32>
    %75 = vector.extract_strided_slice %2 {offsets = [0, 28], sizes = [8, 4], strides = [1, 1]} : vector<8x64xf32> to vector<8x4xf32>
    %cst_35 = arith.constant dense<0.000000e+00> : vector<8x384xf32>
    %76 = tpu.matmul %75, %39, %cst_35 {dimension_numbers = #tpu.dot_dimension_numbers<[1], [0], [0], [1], [0, 0, 1, 1], [], []>} : vector<8x4xf32>, vector<4x384xf32>, vector<8x384xf32> -> vector<8x384xf32>
    %77 = arith.addf %74, %76 : vector<8x384xf32>
    %78 = vector.extract_strided_slice %2 {offsets = [0, 52], sizes = [8, 4], strides = [1, 1]} : vector<8x64xf32> to vector<8x4xf32>
    %cst_36 = arith.constant dense<0.000000e+00> : vector<8x384xf32>
    %79 = tpu.matmul %78, %61, %cst_36 {dimension_numbers = #tpu.dot_dimension_numbers<[1], [0], [0], [1], [0, 0, 1, 1], [], []>} : vector<8x4xf32>, vector<4x384xf32>, vector<8x384xf32> -> vector<8x384xf32>
    %80 = arith.addf %77, %79 : vector<8x384xf32>
    %81 = vector.extract_strided_slice %2 {offsets = [0, 60], sizes = [8, 4], strides = [1, 1]} : vector<8x64xf32> to vector<8x4xf32>
    %c346_i32 = arith.constant 346 : i32
    %82 = tpu.dynamic_rotate %1 by %c346_i32 dim 1 : vector<4x384xf32>, i32 -> vector<4x384xf32>
    %cst_37 = arith.constant dense<0.000000e+00> : vector<8x384xf32>
    %83 = tpu.matmul %81, %82, %cst_37 {dimension_numbers = #tpu.dot_dimension_numbers<[1], [0], [0], [1], [0, 0, 1, 1], [], []>} : vector<8x4xf32>, vector<4x384xf32>, vector<8x384xf32> -> vector<8x384xf32>
    %84 = arith.addf %80, %83 : vector<8x384xf32>
    %85 = vector.broadcast %3 : vector<8x1xf32> to vector<8x384xf32>
    %86 = arith.addf %84, %85 : vector<8x384xf32>
    %cst_38 = arith.constant 0.000000e+00 : f32
    %87 = vector.broadcast %cst_38 : f32 to vector<8x384xf32>
    %88 = arith.maximumf %86, %87 : vector<8x384xf32>
    %c0_39 = arith.constant 0 : index
    %c3 = arith.constant 3 : index
    %c0_40 = arith.constant 0 : index
    %c0_41 = arith.constant 0 : index
    %89 = vector.load %arg4[%c0_39, %c3, %c0_40, %c0_41] : memref<1x4x8x384xf32, #tpu.memory_space<vmem>>, vector<1x1x8x384xf32>
    %90 = vector.shape_cast %89 : vector<1x1x8x384xf32> to vector<8x384xf32>
    %91 = vector.shape_cast %88 : vector<8x384xf32> to vector<1x1x8x384xf32>
    tpu.vector_store %arg4[%c0_39, %c3, %c0_40, %c0_41], %91 {strides = array<i32>} : memref<1x4x8x384xf32, #tpu.memory_space<vmem>>, vector<1x1x8x384xf32>,
    return
  }
  func.func @transform_0(%arg0: i32) -> (i32, i32, i32) {
    %c0_i32 = arith.constant 0 : i32
    %c0_i32_0 = arith.constant 0 : i32
    %c0_i32_1 = arith.constant 0 : i32
    return %arg0, %c0_i32, %c0_i32_0 : i32, i32, i32
  }
  func.func @transform_1(%arg0: i32) -> (i32, i32) {
    %c0_i32 = arith.constant 0 : i32
    %c0_i32_0 = arith.constant 0 : i32
    %c0_i32_1 = arith.constant 0 : i32
    return %c0_i32, %c0_i32_0 : i32, i32
  }
  func.func @transform_2(%arg0: i32) -> (i32, i32) {
    %c0_i32 = arith.constant 0 : i32
    %c0_i32_0 = arith.constant 0 : i32
    %c0_i32_1 = arith.constant 0 : i32
    return %c0_i32, %c0_i32_0 : i32, i32
  }
  func.func @transform_3(%arg0: i32) -> (i32, i32, i32, i32) {
    %c0_i32 = arith.constant 0 : i32
    %c0_i32_0 = arith.constant 0 : i32
    %c0_i32_1 = arith.constant 0 : i32
    %c0_i32_2 = arith.constant 0 : i32
    return %arg0, %c0_i32, %c0_i32_0, %c0_i32_1 : i32, i32, i32, i32
  }
}

</mosaic_0001>

<bundles_post_ra>
// kernel: tpu_custom_call.1
= control target key start
LH: loop header
LB: loop body
LE: loop exit
PB: predicated region body
PF: predicated region fallthrough
CT: control target
= control target key end

     0   :  { %8 = vsyncpa [#allocation3], 0  ;;  %s3771_s0 = inlined_call_operand.hbm [shape: f32[2,4,384], index: 0, kind: input, shape index: {}]   ;;  %s3772_s1 = inlined_call_operand.vmem [shape: f32[8,64], index: 1, kind: input, shape index: {}]   ;;  %s3773_s2 = inlined_call_operand.vmem [shape: f32[8,1], index: 2, kind: input, shape index: {}]   ;;  %s3774_s3 = inlined_call_operand.hbm [shape: f32[2,4,8,384], index: 3, kind: output, shape index: {}]  }
   0x1   :  { %10 = vsyncpa [#allocation3 + $0x1], 0 }
   0x2   :  { %11 = vsyncpa [#allocation4], 0 }
   0x3   :  { %13 = vsyncpa [#allocation4 + $0x1], 0  ;;  %s3290_s12 = smov 0   ;;  %s3292_s13 = smov 0  }
   0x4   :  { %s3294_s14 = smov 0   ;;  %s3296_s15 = smov 0  }
   0x5 LB: > { %s3311_s16 = sadd.s32 4294967295, %s3240_s15   ;;  %s2831_s17 = sadd.s32 4294967294, %s3240_s15   ;;  %s3240_s15 = sphi %s3296_s15, %s3788_s15   ;;  %s3236_s14 = sphi %s3294_s14, %s3787_s14   ;;  %s3232_s13 = sphi %s3292_s13, %s3786_s13   ;;  %s3228_s12 = sphi %s3290_s12, %s3785_s12  }
   0x6   : > { %s3315_s18 = sadd.s32 1, %s3240_s15   ;;  %s26_s19 = sadd.s32 1, %s3236_s14 }
   0x7   : > { %s23_s20 = ssub.s32 %s3240_s15, %s3315_s18  ;;  %p33_p0 = scmp.ne.s32.totalorder %s3236_s14, %s3232_s13 }
   0x8   : > { %p24_p1 = scmp.eq.s32.totalorder %s23_s20, 0  ;;  %p34_p2 = scmp.eq.s32.totalorder %s3240_s15, 0 }
   0x9   : > { %p39_p3 = scmp.ne.s32.totalorder %s3232_s13, %s3228_s12  ;;  %p40_p4 = scmp.eq.s32.totalorder %s3311_s16, 0 }
   0xa   : > { %s3327_s21 = scalar_select %p24_p1, %s3236_s14, %s26_s19  }
   0xb   : > { %p35_p5 = por %p34_p2, %p33_p0  ;;  %p3329_p6 = por %p40_p4, %p39_p3 }
   0xc   : > { %p105_p7 = scmp.eq.s32.totalorder %s3311_s16, 1  ;;  %p111_p8 = scmp.eq.s32.totalorder %s2831_s17, 1 }
   0xd   : > { %p3081_p10 = scmp.lt.s32.totalorder %s3240_s15, 2  ;;  %s137_s25 = sand.u32 1, %s3236_s14  }
   0xe   : > { %p3336_p11 = por %p105_p7, %p33_p0  ;;  %p3340_p12 = por %p111_p8, %p39_p3 }
   0xf   : > { %s3065_s26 = smul.u32 192, %s3240_s15  ;;  %p3351_p13 = pnand %p3081_p10, %p35_p5 }
  0x10   : > { %s3777_s23 = scalar_select %p3336_p11, 1, 0 }
  0x11   : > { %s3778_s24 = scalar_select %p3340_p12, 1, 0 }
  0x12   : > { %s3064_s27 = smul.u32 12, %s137_s25  ;;  %s3349_s30 = scalar_lea.hbm %s3771_s0, %s3065_s26 }
  0x13   : > { %s138_s7 = scalar_lea.sflag [#allocation3], %s137_s25  ;;  %s3144_s8 = scalar_lea.hbm %s3349_s30, 192 }
  0x14   : > { %s141_s5 = scalar_lea.vmem [#allocation2], %s3064_s27  ;;  %p3145_p2 = scmp.ne.s32.totalorder %s3349_s30, %s3144_s8 }
  0x15   : > { %s149_s6 = sshll.u32 %s141_s5, 4  ;;  %p3146_p3 = pneg %p3351_p13  ;;  %s3356_s6 = int_to_ptr.vmem [resolvable:$true] %s149_s6 }
  0x16   : > { %s3149_s11 = scalar_lea.hbm %s3771_s0, 384  ;;  %p3150_p7 = scmp.lt.u32.totalorder %s3349_s30, %s3771_s0 }
  0x17   : > { %p3147_p4 = pnand %p3146_p3, %p3145_p2  ;;  %p3151_p8 = scmp.lt.u32.totalorder %s3149_s11, %s3144_s8 }
  0x18   : > { %p3153_p9 = scmp.lt.u32.totalorder %s3144_s8, %s3349_s30 }
  0x19   : > { %p3148_p5 = pneg %p3147_p4  ;;  %p3152_p10 = por %p3151_p8, %p3150_p7 }
  0x1b   : > { %p3154_p0 = por %p3153_p9, %p3152_p10 }
  0x1d   : > { %p3155_p1 = pnand %p3154_p0, %p3148_p5 }
  0x1f   : > { %3158 = shalt.err (!%p3155_p1)
}
  0x20   : > { %s3159_s20 = scalar_lea.vmem %s3356_s6, 192  ;;  %s3242_s25 = smov [#allocation2]  }
  0x21   : > { %p3160_p2 = scmp.ne.s32.totalorder %s3356_s6, %s3159_s20  ;;  %s3164_s26 = sshll.u32 %s3242_s25, 4  ;;  %s3165_s26 = int_to_ptr.vmem [resolvable:$false] %s3164_s26 }
  0x22   : > { %s3166_s27 = scalar_lea.vmem %s3165_s26, 384  ;;  %p3167_p11 = scmp.lt.s32.totalorder %s3356_s6, %s3165_s26 }
  0x23   : > { %p3162_p4 = pnand %p3160_p2, %p3146_p3  ;;  %p3168_p7 = scmp.lt.s32.totalorder %s3166_s27, %s3159_s20 }
  0x25   : > { %p3163_p12 = pneg %p3162_p4  ;;  %p3169_p8 = por %p3168_p7, %p3167_p11 }
  0x27   : > { %p3170_p9 = pnand %p3169_p8, %p3163_p12 }
  0x29   : > { %3173 = shalt.err (!%p3170_p9)
}
  0x2a   : > { %3076 = dma.hbm_to_vmem [thread:$0]  (!%p3351_p13), %s3349_s30, 192, %s3356_s6, %s138_s7  }
  0x2b   : > { %p3780_p0 = scmp.lt.s32.totalorder %s3240_s15, 3  ;;  %p3781_p1 = scmp.ge.s32.totalorder %s3240_s15, 1 }
  0x2d   : > { %p155_p3 = pnand %p3781_p1, %p3780_p0 }
  0x2e   : > { %s3389_s28 = sand.u32 (!%p155_p3), 1, %s3232_s13  }
  0x2f   : > { %158 = sbr.rel (%p155_p3) target bundleno = 520 (0x208), region = 32  ;;  %s161_s5 = scalar_lea.sflag (!%p155_p3), [#allocation3], %s3389_s28 }
  0x30   : > { %s3066_s29 = smul.u32 (!%p155_p3), 12, %s3389_s28 }
  0x32   : > { %s164_s8 = scalar_lea.vmem (!%p155_p3), [#allocation2], %s3066_s29 }
  0x36   : > { %3219 = dma.done.wait (%p3329_p6), %s161_s5, 192  }
  0x37   : > { %3221 = vsyncadd (%p3329_p6), %s161_s5, 4294967104  ;;  %v3243_v0 = vmov 0.0   ;;  %vm3244_vm0 = vmmov 0   ;;  %v3401_v1 = vld [vmem:[%s164_s8] sm:$0xff]  ;;  %s3245_s30 = smov 127   ;;  %s3246_s6 = smov 120   ;;  %v201_v7 = vlaneseq }
  0x38   : > { %2960 = vmatprep.subr.mxu1 %v3243_v0  ;;  %2962 = vmatprep.mubr.msk.f32.mxu1 %vm3244_vm0, %v3243_v0  ;;  %v3406_v2 = vcombine.high %v3401_v1, %v3401_v1  ;;  %v3411_v3 = vld [vmem:[%s3772_s1] sm:$0xff]  ;;  %v3414_v4 = vld [vmem:[%s164_s8 + $0x8] sm:$0xf]  ;;  %s3247_s7 = smov 110   ;;  %s3248_s9 = smov 96   ;;  %v3266_v5 = vmov 0  }
  0x39   : > { %287 = vmatprep.mubr.f32.mxu0 %v3243_v0  ;;  %195 = vrot.lane.b32.xlu1 %v3401_v1, %s3245_s30  ;;  %s3249_s10 = smov 109   ;;  %s3250_s11 = smov 88   ;;  %v190_v6 = vld [vmem:[%s3773_s2] sm:$0xff]  ;;  %v3456_v9 = vand.u32 127, %v201_v7  ;;  %vm213_vm2 = vcmask 1043456   ;;  %vm210_vm3 = vcmask 31744  }
  0x3a   : > { %197 = vrot.lane.b32.xlu0 %v3406_v2, %s3245_s30  ;;  %s3251_s17 = smov 126   ;;  %s3252_s19 = smov 116   ;;  %3141 = vset.pattern.permute.xlu1 %v3266_v5 }
  0x3b   : > { %s3253_s20 = smov 92   ;;  %s3254_s25 = smov 124   ;;  %3142 = vset.pattern.permute.xlu0 %v3266_v5  ;;  %vm203_vm1 = vcmp.lt.s32.totalorder %v3456_v9, 127  ;;  %vm519_vm4 = vcmp.lt.s32.totalorder %v3456_v9, 110  ;;  %vm686_vm5 = vcmp.lt.s32.totalorder %v3456_v9, 109  ;;  %vm867_vm6 = vcmp.lt.s32.totalorder %v3456_v9, 126 }
  0x3c   : > { %s3255_s26 = smov 108   ;;  %s3256_s27 = smov 84   ;;  %vm1324_vm7 = vcmp.lt.s32.totalorder %v3456_v9, 108  ;;  %vm1791_vm8 = vcmp.lt.s32.totalorder %v3456_v9, 92  ;;  %vm1958_vm9 = vcmp.lt.s32.totalorder %v3456_v9, 91  ;;  %vm2573_vm10 = vcmp.lt.s32.totalorder %v3456_v9, 90 }
  0x3d   : > { %208 = vrot.lane.b32.xlu1 %v3411_v3, %s3246_s6  ;;  %s3257_s29 = smov 112   ;;  %s3258_s5 = smov 104  }
  0x3e   : > { %199 = vrot.lane.b32.xlu0 %v3414_v4, %s3245_s30  ;;  %s3259_s8 = smov 80   ;;  %s3260_s30 = smov 91  }
  0x3f   : > { %s3261_s22 = smov 72   ;;  %s3262_s4 = smov 100  }
  0x40   : > { %s3263_s6 = smov 90   ;;  %p3782_p11 = scmp.ne.s32.totalorder %s3777_s23, 0 }
  0x41   : > { %517 = vrot.lane.b32.xlu1 %v3414_v4, %s3247_s7 }
  0x42   : > { %515 = vrot.lane.b32.xlu0 %v3406_v2, %s3247_s7 }
  0x45   : > { %523 = vrot.lane.b32.xlu1 %v3411_v3, %s3248_s9  ;;  %s3265_s9 = smov 68  }
  0x46   : > { %513 = vrot.lane.b32.xlu0 %v3401_v1, %s3247_s7  ;;  %s3264_s7 = smov 76  }
  0x49   : > { %684 = vrot.lane.b32.xlu1 %v3414_v4, %s3249_s10 }
  0x4a   : > { %682 = vrot.lane.b32.xlu0 %v3406_v2, %s3249_s10 }
  0x4d   : > { %690 = vrot.lane.b32.xlu1 %v3411_v3, %s3250_s11 }
  0x4e   : > { %680 = vrot.lane.b32.xlu0 %v3401_v1, %s3249_s10 }
  0x51   : > { %865 = vrot.lane.b32.xlu1 %v3414_v4, %s3251_s17 }
  0x52   : > { %863 = vrot.lane.b32.xlu0 %v3406_v2, %s3251_s17 }
  0x55   : > { %871 = vrot.lane.b32.xlu1 %v3411_v3, %s3252_s19 }
  0x56   : > { %861 = vrot.lane.b32.xlu0 %v3401_v1, %s3251_s17  ;;  %s3067_s17 = smul.u32 96, %s3389_s28 }
  0x58   : > { %s3695_s19 = scalar_lea.vmem [#allocation5], %s3067_s17 }
  0x59   : > { %1170 = vrot.lane.b32.xlu1 %v3411_v3, %s3253_s20 }
  0x5a   : > { %1025 = vrot.lane.b32.xlu0 %v3411_v3, %s3254_s25  ;;  %s2758_s25 = sshll.u32 %s3695_s19, 4  ;;  %s3725_s25 = int_to_ptr.vmem [resolvable:$true] %s2758_s25 }
  0x5d   : > { %1322 = vrot.lane.b32.xlu1 %v3414_v4, %s3255_s26 }
  0x5e   : > { %1320 = vrot.lane.b32.xlu0 %v3406_v2, %s3255_s26 }
  0x61   : > { %1328 = vrot.lane.b32.xlu1 %v3411_v3, %s3256_s27 }
  0x62   : > { %1318 = vrot.lane.b32.xlu0 %v3401_v1, %s3255_s26 }
  0x65   : > { %1640 = vrot.lane.b32.xlu1 %v3411_v3, %s3257_s29 }
  0x66   : > { %1495 = vrot.lane.b32.xlu0 %v3411_v3, %s3258_s5  ;;  %s3174_s5 = scalar_lea.vmem %s3725_s25, 1536 }
  0x67   : > { %p3175_p6 = scmp.ne.s32.totalorder %s3725_s25, %s3174_s5 }
  0x69   : > { %1789 = vrot.lane.b32.xlu1 %v3414_v4, %s3253_s20  ;;  %p3176_p12 = pnand %p3175_p6, %p3782_p11 }
  0x6a   : > { %1787 = vrot.lane.b32.xlu0 %v3406_v2, %s3253_s20 }
  0x6b   : > { %p3177_p13 = pneg %p3176_p12 }
  0x6d   : > { %1795 = vrot.lane.b32.xlu1 %v3411_v3, %s3259_s8  ;;  %s3267_s8 = smov [#allocation5]  }
  0x6e   : > { %1785 = vrot.lane.b32.xlu0 %v3401_v1, %s3253_s20  ;;  %s3068_s20 = smul.u32 1536, %s3311_s16  ;;  %s2745_s16 = scalar_lea.sflag [#allocation4], %s3389_s28 }
  0x70   : > { %s3723_s29 = scalar_lea.hbm %s3774_s3, %s3068_s20 }
  0x71   : > { %1956 = vrot.lane.b32.xlu1 %v3414_v4, %s3260_s30 }
  0x72   : > { %1954 = vrot.lane.b32.xlu0 %v3406_v2, %s3260_s30 }
  0x75   : > { %1962 = vrot.lane.b32.xlu1 %v3411_v3, %s3261_s22 }
  0x76   : > { %1952 = vrot.lane.b32.xlu0 %v3401_v1, %s3260_s30  ;;  %s3178_s30 = sshll.u32 %s3267_s8, 4  ;;  %s3179_s30 = int_to_ptr.vmem [resolvable:$false] %s3178_s30 }
  0x77   : > { %s3180_s22 = scalar_lea.vmem %s3179_s30, 3072  ;;  %p3181_p5 = scmp.lt.s32.totalorder %s3725_s25, %s3179_s30 }
  0x78   : > { %p3182_p10 = scmp.lt.s32.totalorder %s3180_s22, %s3174_s5 }
  0x79   : > { %2274 = vrot.lane.b32.xlu1 %v3411_v3, %s3255_s26 }
  0x7a   : > { %2129 = vrot.lane.b32.xlu0 %v3411_v3, %s3262_s4  ;;  %p3183_p2 = por %p3182_p10, %p3181_p5 }
  0x7c   : > { %p3184_p4 = pnand %p3183_p2, %p3177_p13 }
  0x7d   : > { %2567 = vrot.lane.b32.xlu1 %v3401_v1, %s3263_s6 }
  0x7e   : > { %2419 = vrot.lane.b32.xlu0 %v3411_v3, %s3264_s7 }
  0x81   : > { %2571 = vrot.lane.b32.xlu1 %v3414_v4, %s3263_s6 }
  0x82   : > { %2569 = vrot.lane.b32.xlu0 %v3406_v2, %s3263_s6 }
  0x85   : > { %849 = vperm.xlu1 %3141, %v190_v6  }
  0x86   : > { %2577 = vrot.lane.b32.xlu0 %v3411_v3, %s3265_s9 }
  0xab   : > { %v196_v8 = vpop.permute.xlu1 %195 }
  0xac   : > { %v198_v10 = vpop.permute.xlu0 %197 }
  0xad   : > { %v3464_v15 = vsel %vm203_vm1, %v196_v8, %v198_v10 }
  0xaf   : > { %v209_v11 = vpop.permute.xlu1 %208 }
  0xb0   : > { %v200_v12 = vpop.permute.xlu0 %199 }
  0xb1   : > { %v3459_v13 = vsel %vm203_vm1, %v198_v10, %v200_v12  ;;  %v206_v14 = vsel %vm203_vm1, %v200_v12, %v196_v8 }
  0xb2   : > { %2836 = vmatprep.subr.msk.mxu0 %vm213_vm2, %v3459_v13  ;;  %2961 = vmatpush3.msk.msra.mxu1 %vm213_vm2, %v206_v14 }
  0xb3   : > { %v518_v16 = vpop.permute.xlu1 %517  ;;  %2837 = vmatpush1.msk.msra.mxu0 %vm213_vm2, %v3464_v15  ;;  %2963 = vmatmul.mubr.msk.f32.vlgmr.msra.gmra.mrb[0].mxu1 %vm210_vm3, %v209_v11 }
  0xb4   : > { %2838 = vmatmul.mubr.msk.f32.vlgmr.msra.gmra.mrb[0].mxu0 %vm210_vm3, %v209_v11  ;;  %2841 = vmatprep.subr.msk.mxu0 %vm213_vm2, %v3406_v2  ;;  %v516_v17 = vpop.permute.xlu0 %515 }
  0xb5   : > { %2842 = vmatpush1.msk.msra.mxu0 %vm213_vm2, %v3401_v1  ;;  %2965 = vmatprep.subr.mxu1 %v3243_v0  ;;  %v3478_v18 = vsel %vm519_vm4, %v516_v17, %v518_v16 }
  0xb6   : > { %2966 = vmatpush3.msk.msra.mxu1 %vm213_vm2, %v3414_v4  ;;  %2967 = vmatprep.mubr.msk.f32.mxu1 %vm3244_vm0, %v3243_v0 }
  0xb7   : > { %v524_v19 = vpop.permute.xlu1 %523  ;;  %2968 = vmatmul.mubr.msk.f32.vlgmr.msra.gmra.mrb[2].mxu1 %vm210_vm3, %v3411_v3  ;;  %2846 = vmatprep.subr.msk.mxu0 %vm213_vm2, %v3478_v18 }
  0xb8   : > { %v514_v20 = vpop.permute.xlu0 %513  ;;  %2970 = vmatprep.subr.mxu1 %v3243_v0  ;;  %2972 = vmatprep.mubr.msk.f32.mxu1 %vm3244_vm0, %v3243_v0 }
  0xb9   : > { %v3493_v21 = vsel %vm519_vm4, %v518_v16, %v514_v20  ;;  %436 = vmatprep.mubr.f32.mxu0 %v3243_v0  ;;  %v3498_v22 = vsel %vm519_vm4, %v514_v20, %v516_v17 }
  0xba   : > { %2971 = vmatpush3.msk.msra.mxu1 %vm213_vm2, %v3493_v21 }
  0xbb   : > { %v685_v23 = vpop.permute.xlu1 %684  ;;  %2973 = vmatmul.mubr.msk.f32.vlgmr.msra.gmra.mrb[4].mxu1 %vm210_vm3, %v524_v19  ;;  %2975 = vmatprep.subr.mxu1 %v3243_v0 }
  0xbc   : > { %2843 = vmatmul.mubr.msk.f32.vlgmr.msra.gmra.mrb[0].mxu0 %vm210_vm3, %v3411_v3  ;;  %v683_v24 = vpop.permute.xlu0 %682  ;;  %2977 = vmatprep.mubr.msk.f32.mxu1 %vm3244_vm0, %v3243_v0 }
  0xbd   : > { %2847 = vmatpush1.msk.msra.mxu0 %vm213_vm2, %v3498_v22  ;;  %v3511_v25 = vsel %vm686_vm5, %v683_v24, %v685_v23  ;;  %600 = vmatprep.mubr.f32.mxu0 %v3243_v0 }
  0xbe   : > { %2851 = vmatprep.subr.msk.mxu0 %vm213_vm2, %v3511_v25 }
  0xbf   : > { %v691_v26 = vpop.permute.xlu1 %690 }
  0xc0   : > { %v681_v27 = vpop.permute.xlu0 %680 }
  0xc1   : > { %v3516_v28 = vsel %vm686_vm5, %v685_v23, %v681_v27  ;;  %v3518_v29 = vsel %vm686_vm5, %v681_v27, %v683_v24 }
  0xc2   : > { %2976 = vmatpush3.msk.msra.mxu1 %vm213_vm2, %v3516_v28 }
  0xc3   : > { %v866_v30 = vpop.permute.xlu1 %865  ;;  %2978 = vmatmul.mubr.msk.f32.vlgmr.msra.gmra.mrb[6].mxu1 %vm210_vm3, %v691_v26  ;;  %2980 = vmatprep.subr.mxu1 %v3243_v0 }
  0xc4   : > { %2848 = vmatmul.mubr.msk.f32.vlgmr.msra.gmra.mrb[0].mxu0 %vm210_vm3, %v524_v19  ;;  %v864_v31 = vpop.permute.xlu0 %863  ;;  %2982 = vmatprep.mubr.msk.f32.mxu1 %vm3244_vm0, %v3243_v0 }
  0xc5   : > { %2852 = vmatpush1.msk.msra.mxu0 %vm213_vm2, %v3518_v29  ;;  %v868_v32 = vsel %vm867_vm6, %v864_v31, %v866_v30  ;;  %767 = vmatprep.mubr.f32.mxu0 %v3243_v0 }
  0xc6   : > { %2856 = vmatprep.subr.msk.mxu0 %vm213_vm2, %v868_v32 }
  0xc7   : > { %v872_v33 = vpop.permute.xlu1 %871 }
  0xc8   : > { %v862_v34 = vpop.permute.xlu0 %861 }
  0xc9   : > { %v870_v35 = vsel %vm867_vm6, %v866_v30, %v862_v34  ;;  %v869_v36 = vsel %vm867_vm6, %v862_v34, %v864_v31 }
  0xca   : > { %2981 = vmatpush3.msk.msra.mxu1 %vm213_vm2, %v870_v35 }
  0xcb   : > { %v1171_v37 = vpop.permute.xlu1 %1170  ;;  %2983 = vmatmul.mubr.msk.f32.vlgmr.msra.gmra.mrb[8].mxu1 %vm210_vm3, %v872_v33  ;;  %2985 = vmatprep.subr.mxu1 %v3243_v0 }
  0xcc   : > { %2853 = vmatmul.mubr.msk.f32.vlgmr.msra.gmra.mrb[0].mxu0 %vm210_vm3, %v691_v26  ;;  %2986 = vmatpush3.msk.msra.mxu1 %vm213_vm2, %v206_v14  ;;  %v1026_v38 = vpop.permute.xlu0 %1025 }
  0xcd   : > { %2857 = vmatpush1.msk.msra.mxu0 %vm213_vm2, %v869_v36  ;;  %2987 = vmatprep.mubr.msk.f32.mxu1 %vm3244_vm0, %v3243_v0 }
  0xce   : > { %2861 = vmatprep.subr.msk.mxu0 %vm213_vm2, %v3459_v13  ;;  %2990 = vmatprep.subr.mxu1 %v3243_v0 }
  0xcf   : > { %v1323_v39 = vpop.permute.xlu1 %1322  ;;  %948 = vmatprep.mubr.f32.mxu0 %v3243_v0  ;;  %2988 = vmatmul.mubr.msk.f32.vlgmr.msra.gmra.mrb[10].mxu1 %vm210_vm3, %v1026_v38 }
  0xd0   : > { %2991 = vmatpush3.msk.msra.mxu1 %vm213_vm2, %v3516_v28  ;;  %2858 = vmatmul.mubr.msk.f32.vlgmr.msra.gmra.mrb[2].mxu0 %vm210_vm3, %v872_v33  ;;  %v1321_v40 = vpop.permute.xlu0 %1320 }
  0xd1   : > { %2862 = vmatpush1.msk.msra.mxu0 %vm213_vm2, %v3464_v15  ;;  %2992 = vmatprep.mubr.msk.f32.mxu1 %vm3244_vm0, %v3243_v0  ;;  %v3567_v45 = vsel %vm1324_vm7, %v1321_v40, %v1323_v39 }
  0xd2   : > { %2866 = vmatprep.subr.msk.mxu0 %vm213_vm2, %v3511_v25  ;;  %2995 = vmatprep.subr.mxu1 %v3243_v0 }
  0xd3   : > { %v1329_v41 = vpop.permute.xlu1 %1328  ;;  %2993 = vmatmul.mubr.msk.f32.vlgmr.msra.gmra.mrb[12].mxu1 %vm210_vm3, %v1171_v37  ;;  %1093 = vmatprep.mubr.f32.mxu0 %v3243_v0 }
  0xd4   : > { %v1319_v42 = vpop.permute.xlu0 %1318  ;;  %2997 = vmatprep.mubr.msk.f32.mxu1 %vm3244_vm0, %v3243_v0 }
  0xd5   : > { %v1327_v43 = vsel %vm1324_vm7, %v1323_v39, %v1319_v42  ;;  %v3590_v49 = vsel %vm1324_vm7, %v1319_v42, %v1321_v40 }
  0xd6   : > { %2996 = vmatpush3.msk.msra.mxu1 %vm213_vm2, %v1327_v43 }
  0xd7   : > { %v3563_v44 = vpop.permute.xlu1 %1640  ;;  %2998 = vmatmul.mubr.msk.f32.vlgmr.msra.gmra.mrb[14].mxu1 %vm210_vm3, %v1329_v41  ;;  %3000 = vmatprep.subr.mxu1 %v3243_v0 }
  0xd8   : > { %2863 = vmatmul.mubr.msk.f32.vlgmr.msra.gmra.mrb[2].mxu0 %vm210_vm3, %v1026_v38  ;;  %3001 = vmatpush3.msk.msra.mxu1 %vm213_vm2, %v3516_v28  ;;  %v1496_v46 = vpop.permute.xlu0 %1495 }
  0xd9   : > { %2867 = vmatpush1.msk.msra.mxu0 %vm213_vm2, %v3518_v29  ;;  %3002 = vmatprep.mubr.msk.f32.mxu1 %vm3244_vm0, %v3243_v0 }
  0xda   : > { %3005 = vmatprep.subr.mxu1 %v3243_v0  ;;  %2871 = vmatprep.subr.msk.mxu0 %vm213_vm2, %v3567_v45 }
  0xdb   : > { %v1790_v47 = vpop.permute.xlu1 %1789  ;;  %3003 = vmatmul.mubr.msk.f32.vlgmr.msra.gmra.mrb[16].mxu1 %vm210_vm3, %v1496_v46  ;;  %1238 = vmatprep.mubr.f32.mxu0 %v3243_v0 }
  0xdc   : > { %3006 = vmatpush3.msk.msra.mxu1 %vm213_vm2, %v3493_v21  ;;  %v1788_v48 = vpop.permute.xlu0 %1787  ;;  %3007 = vmatprep.mubr.msk.f32.mxu1 %vm3244_vm0, %v3243_v0 }
  0xdd   : > { %3010 = vmatprep.subr.mxu1 %v3243_v0  ;;  %v1792_v59 = vsel %vm1791_vm8, %v1788_v48, %v1790_v47 }
  0xdf   : > { %v1796_v50 = vpop.permute.xlu1 %1795  ;;  %3008 = vmatmul.mubr.msk.f32.vlgmr.msra.gmra.mrb[18].mxu1 %vm210_vm3, %v3563_v44 }
  0xe0   : > { %2868 = vmatmul.mubr.msk.f32.vlgmr.msra.gmra.mrb[2].mxu0 %vm210_vm3, %v1171_v37  ;;  %v1786_v51 = vpop.permute.xlu0 %1785  ;;  %3012 = vmatprep.mubr.msk.f32.mxu1 %vm3244_vm0, %v3243_v0 }
  0xe1   : > { %2872 = vmatpush1.msk.msra.mxu0 %vm213_vm2, %v3590_v49  ;;  %v1794_v52 = vsel %vm1791_vm8, %v1790_v47, %v1786_v51  ;;  %1405 = vmatprep.mubr.f32.mxu0 %v3243_v0  ;;  %v1793_v63 = vsel %vm1791_vm8, %v1786_v51, %v1788_v48 }
  0xe2   : > { %2879 = vmatprep.subr.msk.mxu0 %vm213_vm2, %v3511_v25  ;;  %3011 = vmatpush3.msk.msra.mxu1 %vm213_vm2, %v1794_v52 }
  0xe3   : > { %v1957_v53 = vpop.permute.xlu1 %1956  ;;  %3013 = vmatmul.mubr.msk.f32.vlgmr.msra.gmra.mrb[20].mxu1 %vm210_vm3, %v1796_v50  ;;  %3015 = vmatprep.subr.mxu1 %v3243_v0 }
  0xe4   : > { %v1955_v54 = vpop.permute.xlu0 %1954  ;;  %3017 = vmatprep.mubr.msk.f32.mxu1 %vm3244_vm0, %v3243_v0 }
  0xe5   : > { %v1959_v2 = vsel %vm1958_vm9, %v1955_v54, %v1957_v53 }
  0xe7   : > { %v1963_v55 = vpop.permute.xlu1 %1962 }
  0xe8   : > { %2873 = vmatmul.mubr.msk.f32.vlgmr.msra.gmra.mrb[2].mxu0 %vm210_vm3, %v1329_v41  ;;  %v1953_v56 = vpop.permute.xlu0 %1952 }
  0xe9   : > { %2880 = vmatpush1.msk.msra.mxu0 %vm213_vm2, %v3518_v29  ;;  %v1961_v57 = vsel %vm1958_vm9, %v1957_v53, %v1953_v56  ;;  %1563 = vmatprep.mubr.f32.mxu0 %v3243_v0  ;;  %v1960_v6 = vsel %vm1958_vm9, %v1953_v56, %v1955_v54 }
  0xea   : > { %2884 = vmatprep.subr.msk.mxu0 %vm213_vm2, %v3478_v18  ;;  %3016 = vmatpush3.msk.msra.mxu1 %vm213_vm2, %v1961_v57 }
  0xeb   : > { %v2275_v58 = vpop.permute.xlu1 %2274  ;;  %3018 = vmatmul.mubr.msk.f32.vlgmr.msra.gmra.mrb[22].mxu1 %vm210_vm3, %v1963_v55  ;;  %3020 = vmatprep.subr.mxu1 %v3243_v0 }
  0xec   : > { %2881 = vmatmul.mubr.msk.f32.vlgmr.msra.gmra.mrb[4].mxu0 %vm210_vm3, %v1496_v46  ;;  %3021 = vmatpush3.msk.msra.mxu1 %vm213_vm2, %v1327_v43  ;;  %v2130_v60 = vpop.permute.xlu0 %2129 }
  0xed   : > { %2885 = vmatpush1.msk.msra.mxu0 %vm213_vm2, %v3498_v22  ;;  %3022 = vmatprep.mubr.msk.f32.mxu1 %vm3244_vm0, %v3243_v0 }
  0xee   : > { %3025 = vmatprep.subr.mxu1 %v3243_v0  ;;  %2889 = vmatprep.subr.msk.mxu0 %vm213_vm2, %v1792_v59 }
  0xef   : > { %v2568_v61 = vpop.permute.xlu1 %2567  ;;  %3023 = vmatmul.mubr.msk.f32.vlgmr.msra.gmra.mrb[24].mxu1 %vm210_vm3, %v2130_v60  ;;  %1708 = vmatprep.mubr.f32.mxu0 %v3243_v0 }
  0xf0   : > { %3026 = vmatpush3.msk.msra.mxu1 %vm213_vm2, %v3516_v28  ;;  %3027 = vmatprep.mubr.msk.f32.mxu1 %vm3244_vm0, %v3243_v0  ;;  %v2420_v62 = vpop.permute.xlu0 %2419 }
  0xf1   : > { %3030 = vmatprep.subr.mxu1 %v3243_v0 }
  0xf3   : > { %v2572_v1 = vpop.permute.xlu1 %2571  ;;  %3028 = vmatmul.mubr.msk.f32.vlgmr.msra.gmra.mrb[26].mxu1 %vm210_vm3, %v2275_v58 }
  0xf4   : > { %2886 = vmatmul.mubr.msk.f32.vlgmr.msra.gmra.mrb[4].mxu0 %vm210_vm3, %v3563_v44  ;;  %3031 = vmatpush3.msk.msra.mxu1 %vm213_vm2, %v1961_v57  ;;  %v2570_v3 = vpop.permute.xlu0 %2569  ;;  %v2576_v4 = vsel %vm2573_vm10, %v2572_v1, %v2568_v61 }
  0xf5   : > { %2890 = vmatpush1.msk.msra.mxu0 %vm213_vm2, %v1793_v63  ;;  %1872 = vmatprep.mubr.f32.mxu0 %v3243_v0  ;;  %v2574_v7 = vsel %vm2573_vm10, %v2570_v3, %v2572_v1  ;;  %v2575_v8 = vsel %vm2573_vm10, %v2568_v61, %v2570_v3 }
  0xf6   : > { %2894 = vmatprep.subr.msk.mxu0 %vm213_vm2, %v1959_v2  ;;  %3032 = vmatprep.mubr.msk.f32.mxu1 %vm3244_vm0, %v3243_v0 }
  0xf7   : > { %3033 = vmatmul.mubr.msk.f32.vlgmr.msra.gmra.mrb[28].mxu1 %vm210_vm3, %v2420_v62  ;;  %3035 = vmatprep.subr.mxu1 %v3243_v0 }
  0xf8   : > { %3036 = vmatpush3.msk.msra.mxu1 %vm213_vm2, %v2576_v4  ;;  %3037 = vmatprep.mubr.msk.f32.mxu1 %vm3244_vm0, %v3243_v0  ;;  %v2578_v5 = vpop.permute.xlu0 %2577 }
  0xfb   : > { %3038 = vmatmul.mubr.msk.f32.vlgmr.msra.gmra.mrb[30].mxu1 %vm210_vm3, %v2578_v5 }
  0xfc   : > { %2891 = vmatmul.mubr.msk.f32.vlgmr.msra.gmra.mrb[4].mxu0 %vm210_vm3, %v1796_v50 }
  0xfd   : > { %2895 = vmatpush1.msk.msra.mxu0 %vm213_vm2, %v1960_v6  ;;  %2039 = vmatprep.mubr.f32.mxu0 %v3243_v0 }
  0xfe   : > { %2902 = vmatprep.subr.msk.mxu0 %vm213_vm2, %v3567_v45 }
 0x104   : > { %2896 = vmatmul.mubr.msk.f32.vlgmr.msra.gmra.mrb[4].mxu0 %vm210_vm3, %v1963_v55  ;;  %v3692_v9 = vpop.permute.xlu1 %849 }
 0x105   : > { %2903 = vmatpush1.msk.msra.mxu0 %vm213_vm2, %v3590_v49  ;;  %2197 = vmatprep.mubr.f32.mxu0 %v3243_v0 }
 0x106   : > { %2907 = vmatprep.subr.msk.mxu0 %vm213_vm2, %v3511_v25 }
 0x108   : > { %2904 = vmatmul.mubr.msk.f32.vlgmr.msra.gmra.mrb[6].mxu0 %vm210_vm3, %v2130_v60 }
 0x109   : > { %2908 = vmatpush1.msk.msra.mxu0 %vm213_vm2, %v3518_v29  ;;  %2342 = vmatprep.mubr.f32.mxu0 %v3243_v0 }
 0x10a   : > { %2912 = vmatprep.subr.msk.mxu0 %vm213_vm2, %v1959_v2 }
 0x110   : > { %2909 = vmatmul.mubr.msk.f32.vlgmr.msra.gmra.mrb[6].mxu0 %vm210_vm3, %v2275_v58 }
 0x111   : > { %2913 = vmatpush1.msk.msra.mxu0 %vm213_vm2, %v1960_v6  ;;  %2487 = vmatprep.mubr.f32.mxu0 %v3243_v0 }
 0x112   : > { %2917 = vmatprep.subr.msk.mxu0 %vm213_vm2, %v2574_v7 }
 0x118   : > { %2914 = vmatmul.mubr.msk.f32.vlgmr.msra.gmra.mrb[6].mxu0 %vm210_vm3, %v2420_v62 }
 0x119   : > { %2918 = vmatpush1.msk.msra.mxu0 %vm213_vm2, %v2575_v8  ;;  %2654 = vmatprep.mubr.f32.mxu0 %v3243_v0 }
 0x120   : > { %2919 = vmatmul.mubr.msk.f32.vlgmr.msra.gmra.mrb[6].mxu0 %vm210_vm3, %v2578_v5 }
 0x186   : > { %v360_v10 = vpop.f32.mrb[0].mxu1 }
 0x187   : > { %v2964_v11 = vpop.f32.mrb[1].mxu1 }
 0x18a   : > { %v509_v12 = vpop.f32.mrb[2].mxu1 }
 0x18b   : > { %v510_v13 = vadd.f32 %v509_v12, %v360_v10  ;;  %v2969_v14 = vpop.f32.mrb[3].mxu1 }
 0x18e   : > { %v673_v15 = vpop.f32.mrb[4].mxu1 }
 0x18f   : > { %v679_v16 = vadd.f32 %v673_v15, %v510_v13  ;;  %v2974_v17 = vpop.f32.mrb[5].mxu1 }
 0x196   : > { %v840_v18 = vpop.f32.mrb[6].mxu1 }
 0x197   : > { %v846_v19 = vadd.f32 %v840_v18, %v679_v16  ;;  %v2979_v20 = vpop.f32.mrb[7].mxu1 }
 0x199   : > { %v854_v21 = vadd.f32 %v3692_v9, %v846_v19 }
 0x19b   : > { %v857_v22 = vmax.f32 %v854_v21, 0.0 }
 0x19d   : > { %860 = vst [vmem:[%s3695_s19 + $0x10] sm:$0xff] %v857_v22 }
 0x19e   : > { %v1021_v0 = vpop.f32.mrb[8].mxu1 }
 0x19f   : > { %v769_v23 = vpop.f32.mrb[0].mxu0  ;;  %v2984_v24 = vpop.f32.mrb[9].mxu1 }
 0x1a0   : > { %v852_v25 = vadd.f32 %v3692_v9, %v769_v23  ;;  %v771_v26 = vpop.f32.mrb[1].mxu0 }
 0x1a1   : > { %v853_v27 = vadd.f32 %v3692_v9, %v771_v26 }
 0x1a2   : > { %v855_v28 = vmax.f32 %v852_v25, 0.0  ;;  %v1166_v29 = vpop.f32.mrb[10].mxu1 }
 0x1a3   : > { %v856_v30 = vmax.f32 %v853_v27, 0.0  ;;  %v1167_v31 = vadd.f32 %v1166_v29, %v1021_v0  ;;  %v2989_v32 = vpop.f32.mrb[11].mxu1 }
 0x1a4   : > { %858 = vst [vmem:[%s3695_s19] sm:$0xff] %v855_v28 }
 0x1a5   : > { %859 = vst [vmem:[%s3695_s19 + $0x8] sm:$0xff] %v856_v30 }
 0x1a6   : > { %v1311_v33 = vpop.f32.mrb[12].mxu1 }
 0x1a7   : > { %v1317_v34 = vadd.f32 %v1311_v33, %v1167_v31  ;;  %v2994_v35 = vpop.f32.mrb[13].mxu1 }
 0x1aa   : > { %v1478_v36 = vpop.f32.mrb[14].mxu1 }
 0x1ab   : > { %v1484_v37 = vadd.f32 %v1478_v36, %v1317_v34  ;;  %v2999_v38 = vpop.f32.mrb[15].mxu1 }
 0x1ad   : > { %v1487_v39 = vadd.f32 %v1484_v37, %v3692_v9 }
 0x1ae   : > { %v1636_v40 = vpop.f32.mrb[16].mxu1 }
 0x1af   : > { %v1490_v41 = vmax.f32 %v1487_v39, 0.0  ;;  %v3004_v42 = vpop.f32.mrb[17].mxu1 }
 0x1b1   : > { %2878 = vst [vmem:[%s3695_s19 + $0x28] sm:$0xff] %v1490_v41 }
 0x1b2   : > { %v1781_v43 = vpop.f32.mrb[18].mxu1 }
 0x1b3   : > { %v1782_v44 = vadd.f32 %v1781_v43, %v1636_v40  ;;  %v3009_v45 = vpop.f32.mrb[19].mxu1 }
 0x1b6   : > { %v1945_v46 = vpop.f32.mrb[20].mxu1 }
 0x1b7   : > { %v1951_v47 = vadd.f32 %v1945_v46, %v1782_v44  ;;  %v3014_v48 = vpop.f32.mrb[21].mxu1 }
 0x1bb   : > { %v1407_v49 = vpop.f32.mrb[2].mxu0 }
 0x1bc   : > { %v1485_v50 = vadd.f32 %v1407_v49, %v3692_v9  ;;  %v1409_v51 = vpop.f32.mrb[3].mxu0 }
 0x1bd   : > { %v1486_v52 = vadd.f32 %v1409_v51, %v3692_v9 }
 0x1be   : > { %v1488_v53 = vmax.f32 %v1485_v50, 0.0  ;;  %v2112_v54 = vpop.f32.mrb[22].mxu1 }
 0x1bf   : > { %v1489_v55 = vmax.f32 %v1486_v52, 0.0  ;;  %v2118_v56 = vadd.f32 %v2112_v54, %v1951_v47  ;;  %v3019_v57 = vpop.f32.mrb[23].mxu1 }
 0x1c0   : > { %2876 = vst [vmem:[%s3695_s19 + $0x18] sm:$0xff] %v1488_v53 }
 0x1c1   : > { %2877 = vst [vmem:[%s3695_s19 + $0x20] sm:$0xff] %v1489_v55  ;;  %v2121_v58 = vadd.f32 %v2118_v56, %v3692_v9 }
 0x1c2   : > { %v2270_v59 = vpop.f32.mrb[24].mxu1 }
 0x1c3   : > { %v2124_v60 = vmax.f32 %v2121_v58, 0.0  ;;  %v3024_v61 = vpop.f32.mrb[25].mxu1 }
 0x1c5   : > { %2901 = vst [vmem:[%s3695_s19 + $0x40] sm:$0xff] %v2124_v60 }
 0x1c6   : > { %v2415_v62 = vpop.f32.mrb[26].mxu1 }
 0x1c7   : > { %v2416_v63 = vadd.f32 %v2415_v62, %v2270_v59  ;;  %v3029_v1 = vpop.f32.mrb[27].mxu1 }
 0x1ca   : > { %v2560_v2 = vpop.f32.mrb[28].mxu1 }
 0x1cb   : > { %v2566_v3 = vadd.f32 %v2560_v2, %v2416_v63  ;;  %v3034_v4 = vpop.f32.mrb[29].mxu1 }
 0x1ce   : > { %v2727_v5 = vpop.f32.mrb[30].mxu1 }
 0x1cf   : > { %v2733_v6 = vadd.f32 %v2727_v5, %v2566_v3  ;;  %v3039_v7 = vpop.f32.mrb[31].mxu1 }
 0x1d1   : > { %v2736_v8 = vadd.f32 %v2733_v6, %v3692_v9 }
 0x1d3   : > { %v2739_v10 = vmax.f32 %v2736_v8, 0.0 }
 0x1d5   : > { %2924 = vst [vmem:[%s3695_s19 + $0x58] sm:$0xff] %v2739_v10 }
 0x1d7   : > { %v2041_v11 = vpop.f32.mrb[4].mxu0 }
 0x1d8   : > { %v2119_v12 = vadd.f32 %v2041_v11, %v3692_v9  ;;  %v2043_v13 = vpop.f32.mrb[5].mxu0 }
 0x1d9   : > { %v2120_v14 = vadd.f32 %v2043_v13, %v3692_v9 }
 0x1da   : > { %v2122_v15 = vmax.f32 %v2119_v12, 0.0 }
 0x1db   : > { %v2123_v16 = vmax.f32 %v2120_v14, 0.0 }
 0x1dc   : > { %2899 = vst [vmem:[%s3695_s19 + $0x30] sm:$0xff] %v2122_v15 }
 0x1dd   : > { %2900 = vst [vmem:[%s3695_s19 + $0x38] sm:$0xff] %v2123_v16 }
 0x1f3   : > { %v2656_v17 = vpop.f32.mrb[6].mxu0 }
 0x1f4   : > { %v2734_v18 = vadd.f32 %v2656_v17, %v3692_v9  ;;  %v2658_v19 = vpop.f32.mrb[7].mxu0 }
 0x1f5   : > { %v2735_v20 = vadd.f32 %v2658_v19, %v3692_v9 }
 0x1f6   : > { %v2737_v21 = vmax.f32 %v2734_v18, 0.0 }
 0x1f7   : > { %v2738_v22 = vmax.f32 %v2735_v20, 0.0 }
 0x1f8   : > { %2922 = vst [vmem:[%s3695_s19 + $0x48] sm:$0xff] %v2737_v21 }
 0x1f9   : > { %2923 = vst [vmem:[%s3695_s19 + $0x50] sm:$0xff] %v2738_v22 }
 0x1fa   : > { %3187 = shalt.err (!%p3184_p4)
}
 0x1fb   : > { %s3188_s4 = scalar_lea.hbm %s3723_s29, 1536  ;;  %s3192_s9 = scalar_lea.hbm %s3774_s3, 3072 }
 0x1fc   : > { %p3189_p7 = scmp.ne.s32.totalorder %s3723_s29, %s3188_s4  ;;  %p3193_p0 = scmp.lt.u32.totalorder %s3723_s29, %s3774_s3 }
 0x1fd   : > { %p3194_p1 = scmp.lt.u32.totalorder %s3192_s9, %s3188_s4  ;;  %p3196_p6 = scmp.lt.u32.totalorder %s3188_s4, %s3723_s29 }
 0x1fe   : > { %p3190_p8 = pnand %p3189_p7, %p3782_p11 }
 0x1ff   : > { %p3195_p3 = por %p3194_p1, %p3193_p0 }
 0x200   : > { %p3191_p9 = pneg %p3190_p8 }
 0x201   : > { %p3197_p12 = por %p3196_p6, %p3195_p3 }
 0x203   : > { %p3198_p13 = pnand %p3197_p12, %p3191_p9 }
 0x205   : > { %3201 = shalt.err (!%p3198_p13)
}
 0x206   : > { %s3268_s17 = smov 384   ;;  %s3269_s19 = smov 24  }
 0x207   : > { %3071 = dma.vmem_to_hbm [thread:$0]  (%p3782_p11), %s3725_s25, 1536, %s3723_s29, %s2745_s16, %s3268_s17, %s3268_s17, %s3269_s19  }
 0x208 PF: > { %s2773_s20 = sand.u32 1, %s3228_s12   ;;  %p3783_p5 = scmp.ne.s32.totalorder %s3778_s24, 0 }
 0x209   : > { %p3784_p10 = scmp.ge.s32.totalorder %s3240_s15, 2  ;;  %s2774_s26 = scalar_lea.sflag [#allocation4], %s2773_s20 }
 0x20b   : > { %p3078_p2 = pnand %p3784_p10, %p3783_p5 }
 0x20d   : > { %3223 = dma.done.wait (!%p3078_p2), %s2774_s26, 1536  }
 0x20e   : > { %3225 = vsyncadd (!%p3078_p2), %s2774_s26, 4294965760  ;;  %p16_p4 = scmp.ge.s32.totalorder %s3315_s18, 4   ;;  %s3785_s12 = smov %s3232_s13 }
 0x20f   : > { %s3786_s13 = smov %s3236_s14  ;;  %s3787_s14 = smov %s3327_s21 }
 0x210   : > { %s3788_s15 = smov %s3315_s18  ;;  %18 = sbr.rel (!%p16_p4) target bundleno = 5 (0x5), region = 80 }
 0x217   :  { %2779 = vsyncpa [#allocation3], 1 }
 0x218   :  { %2781 = vsyncpa [#allocation3 + $0x1], 1 }
 0x219   :  { %2782 = vsyncpa [#allocation4], 1 }
 0x21a   :  { %2784 = vsyncpa [#allocation4 + $0x1], 1 }

</bundles_post_ra>
